<compile_context>
chip_gen: v7x
topology: tpu7x:2x2x1
jax: 0.10.0
libtpu: 0.0.40
codegen_flags: <defaults>
</compile_context>

<pallas_src>
import jax
import jax.numpy as jnp
from jax.experimental import pallas as pl
from jax.experimental.pallas import tpu as pltpu

_EPS = 1e-5
_PAD = 128  # lane width used to pad narrow feature dims and the output


def _mlp_kernel(x_ref,
                w1_ref, b1_ref,
                w2_ref, b2_ref,
                w3_ref, b3_ref,
                w4_ref, b4_ref,
                w5_ref, b5_ref,
                o_ref):
    cdt = w1_ref.dtype  # matmul operand dtype (f32 or bf16); accumulation stays f32

    # Linear(input_dim, 256) + BN(256) + ReLU   (BN folded into w1/b1; Dropout==identity)
    h = jnp.dot(x_ref[...], w1_ref[...], preferred_element_type=jnp.float32)
    h = jnp.maximum(h + b1_ref[...], 0.0)

    # Linear(256, 128) + BN(128) + ReLU
    h = jnp.dot(h.astype(cdt), w2_ref[...], preferred_element_type=jnp.float32)
    h = jnp.maximum(h + b2_ref[...], 0.0)

    # Linear(128, 64) + BN(64) + ReLU           (out padded 64 -> 128, pad cols are zero)
    h = jnp.dot(h.astype(cdt), w3_ref[...], preferred_element_type=jnp.float32)
    h = jnp.maximum(h + b3_ref[...], 0.0)

    # Linear(64, 32) + ReLU                     (out padded 32 -> 128)
    h = jnp.dot(h.astype(cdt), w4_ref[...], preferred_element_type=jnp.float32)
    h = jnp.maximum(h + b4_ref[...], 0.0)

    # Linear(32, 2)                             (out padded 2 -> 128; wrapper slices [:, :2])
    o_ref[...] = (jnp.dot(h.astype(cdt), w5_ref[...],
                          preferred_element_type=jnp.float32) + b5_ref[...])


def _round_up(n, m):
    return ((n + m - 1) // m) * m


def deep_predictor_forward(x, params, *, tile_m=512, compute_dtype=jnp.float32):
    """x: (B, input_dim) f32.  params: folded/padded weights from fold_params().

    compute_dtype: dtype fed to the MXU (jnp.float32 or jnp.bfloat16).  Accumulation
    and the bias/ReLU epilogue are always f32.
    """
    B, D_in = x.shape
    D_in_pad = params["w1"].shape[0]
    assert D_in_pad >= D_in, "params were folded for a smaller input_dim"

    # Batch tile: multiple of 8 sublanes, don't over-pad tiny batches.  Default 512
    # rows amortizes per-grid-step overhead and fills the MXU row dimension.
    tile = min(tile_m, max(8, _round_up(B, 8)))
    B_pad = _round_up(B, tile)

    # Pad batch rows (to a tile multiple) and feature lanes (to the folded/padded
    # input width, a multiple of 128) so every MXU pass is dense.
    if B_pad != B or D_in_pad != D_in:
        x = jnp.pad(x, ((0, B_pad - B), (0, D_in_pad - D_in)))

    x = x.astype(compute_dtype)
    weight_args = []
    for idx in range(1, 6):
        weight_args.append(params[f"w{idx}"].astype(compute_dtype))
        weight_args.append(params[f"b{idx}"])  # biases / epilogue stay f32
    weight_args = tuple(weight_args)

    def full_spec(a):
        # whole (small) parameter resident in VMEM; constant block index means it is
        # DMA'd once and reused for every grid step
        return pl.BlockSpec(a.shape, lambda i: (0, 0))

    grid = (B_pad // tile,)
    out = pl.pallas_call(
        _mlp_kernel,
        out_shape=jax.ShapeDtypeStruct((B_pad, _PAD), jnp.float32),
        grid_spec=pltpu.PrefetchScalarGridSpec(
            num_scalar_prefetch=0,
            grid=grid,
            in_specs=[pl.BlockSpec((tile, D_in_pad), lambda i: (i, 0))]
                     + [full_spec(a) for a in weight_args],
            out_specs=pl.BlockSpec((tile, _PAD), lambda i: (i, 0)),
        ),
        compiler_params=pltpu.CompilerParams(
            dimension_semantics=("parallel",)),
    )(x, *weight_args)
    return out[:B, :2]


def init_raw_params(input_dim, key):
    """PyTorch-shaped parameters: Linear w (out,in), b (out,); BN gamma/beta/mean/var."""
    dims = [(input_dim, 256), (256, 128), (128, 64), (64, 32), (32, 2)]
    raw = {}
    k = key
    for idx, (din, dout) in enumerate(dims, start=1):
        k, kw, kb = jax.random.split(k, 3)
        bound = float(din) ** -0.5
        raw[f"w{idx}"] = jax.random.uniform(kw, (dout, din), jnp.float32, -bound, bound)
        raw[f"b{idx}"] = jax.random.uniform(kb, (dout,), jnp.float32, -bound, bound)
    for idx, n in zip((1, 2, 3), (256, 128, 64)):
        ar = jnp.arange(n, dtype=jnp.float32)
        raw[f"gamma{idx}"] = 1.0 + 0.01 * ar / n
        raw[f"beta{idx}"] = 0.02 * jnp.sin(ar)
        raw[f"mean{idx}"] = 0.05 * jnp.cos(ar)
        raw[f"var{idx}"] = 1.0 + 0.1 * (ar % 7) / 7.0
    return raw


def fold_params(raw, input_dim):
    """Fold eval-mode BatchNorm into the Linear weights and zero-pad every feature
    dim that is narrower than 128 up to 128 lanes (input dim up to a multiple of
    128), so all vregs, MXU contractions and the output store are dense."""
    d_in_pad = _round_up(input_dim, _PAD)
    in_pad = {1: d_in_pad, 2: 256, 3: 128, 4: _PAD, 5: _PAD}
    out_pad = {1: 256, 2: 128, 3: _PAD, 4: _PAD, 5: _PAD}
    params = {}
    for idx in range(1, 6):
        w = raw[f"w{idx}"].T            # (in, out)
        b = raw[f"b{idx}"]
        if idx in (1, 2, 3):            # fold BatchNorm1d (running stats, eval mode)
            scale = raw[f"gamma{idx}"] / jnp.sqrt(raw[f"var{idx}"] + _EPS)
            shift = raw[f"beta{idx}"] - raw[f"mean{idx}"] * scale
            w = w * scale[None, :]
            b = b * scale + shift
        din, dout = w.shape
        w = jnp.pad(w, ((0, in_pad[idx] - din), (0, out_pad[idx] - dout)))
        b = jnp.pad(b, (0, out_pad[idx] - dout))
        params[f"w{idx}"] = w
        params[f"b{idx}"] = b.reshape(1, out_pad[idx])
    return params


def reference_forward(x, raw):
    """Pure-JAX eval-mode reference matching the PyTorch module (unfolded, unpadded)."""
    def bn(h, idx):
        inv = raw[f"gamma{idx}"] / jnp.sqrt(raw[f"var{idx}"] + _EPS)
        return (h - raw[f"mean{idx}"]) * inv + raw[f"beta{idx}"]

    h = jnp.maximum(bn(x @ raw["w1"].T + raw["b1"], 1), 0.0)
    h = jnp.maximum(bn(h @ raw["w2"].T + raw["b2"], 2), 0.0)
    h = jnp.maximum(bn(h @ raw["w3"].T + raw["b3"], 3), 0.0)
    h = jnp.maximum(h @ raw["w4"].T + raw["b4"], 0.0)
    return h @ raw["w5"].T + raw["b5"]


if __name__ == "__main__":
    key = jax.random.PRNGKey(0)
    kx, kp = jax.random.split(key)

    batch, input_dim = 8, 32
    x = jax.random.normal(kx, (batch, input_dim), jnp.float32)
    raw = init_raw_params(input_dim, kp)
    params = fold_params(raw, input_dim)
    ref = reference_forward(x, raw)

    # f32 matmul path (bitwise-close to the reference)
    out = jax.block_until_ready(deep_predictor_forward(x, params))
    assert out.shape == (batch, 2)
    assert jnp.allclose(out, ref, atol=1e-4, rtol=1e-4), "f32 mismatch vs reference"

    # bf16 matmul-operand path (full MXU rate on v6e/v7x), f32 accumulate + epilogue
    out_bf16 = jax.block_until_ready(
        deep_predictor_forward(x, params, compute_dtype=jnp.bfloat16))
    assert out_bf16.shape == (batch, 2)
    assert jnp.allclose(out_bf16, ref, atol=1e-1, rtol=1e-1), "bf16 mismatch vs reference"

    # non-multiple-of-tile batch: wrapper pads batch rows / input lanes and slices back
    batch2 = 13
    x2 = jax.random.normal(kx, (batch2, input_dim), jnp.float32)
    out2 = jax.block_until_ready(deep_predictor_forward(x2, params, tile_m=512))
    assert out2.shape == (batch2, 2)
    assert jnp.allclose(out2, reference_forward(x2, raw), atol=1e-4, rtol=1e-4), \
        "padded-batch mismatch vs reference"

    print("KERNEL_OK")
</pallas_src>

<mosaic_0001>
module attributes {stable_mosaic.version = 11 : i64} {
  func.func @_mlp_kernel(%arg0: i32, %arg1: memref<8x128xf32, #tpu.memory_space<vmem>>, %arg2: memref<128x256xf32, #tpu.memory_space<vmem>>, %arg3: memref<1x256xf32, #tpu.memory_space<vmem>>, %arg4: memref<256x128xf32, #tpu.memory_space<vmem>>, %arg5: memref<1x128xf32, #tpu.memory_space<vmem>>, %arg6: memref<128x128xf32, #tpu.memory_space<vmem>>, %arg7: memref<1x128xf32, #tpu.memory_space<vmem>>, %arg8: memref<128x128xf32, #tpu.memory_space<vmem>>, %arg9: memref<1x128xf32, #tpu.memory_space<vmem>>, %arg10: memref<128x128xf32, #tpu.memory_space<vmem>>, %arg11: memref<1x128xf32, #tpu.memory_space<vmem>>, %arg12: memref<8x128xf32, #tpu.memory_space<vmem>>) attributes {dimension_semantics = [#tpu.dimension_semantics<parallel>], iteration_bounds = array<i64: 1>, scalar_prefetch = 0 : i64, scratch_operands = 0 : i64, tpu.core_type = #tpu.core_type<tc>, window_params = [{transform_indices = @transform_0, window_bounds = array<i64: 8, 128>}, {pipeline_mode = #tpu.pipeline_mode<synchronous>, transform_indices = @transform_1, window_bounds = array<i64: 128, 256>}, {pipeline_mode = #tpu.pipeline_mode<synchronous>, transform_indices = @transform_2, window_bounds = array<i64: 1, 256>}, {pipeline_mode = #tpu.pipeline_mode<synchronous>, transform_indices = @transform_3, window_bounds = array<i64: 256, 128>}, {pipeline_mode = #tpu.pipeline_mode<synchronous>, transform_indices = @transform_4, window_bounds = array<i64: 1, 128>}, {pipeline_mode = #tpu.pipeline_mode<synchronous>, transform_indices = @transform_5, window_bounds = array<i64: 128, 128>}, {pipeline_mode = #tpu.pipeline_mode<synchronous>, transform_indices = @transform_6, window_bounds = array<i64: 1, 128>}, {pipeline_mode = #tpu.pipeline_mode<synchronous>, transform_indices = @transform_7, window_bounds = array<i64: 128, 128>}, {pipeline_mode = #tpu.pipeline_mode<synchronous>, transform_indices = @transform_8, window_bounds = array<i64: 1, 128>}, {pipeline_mode = #tpu.pipeline_mode<synchronous>, transform_indices = @transform_9, window_bounds = array<i64: 128, 128>}, {pipeline_mode = #tpu.pipeline_mode<synchronous>, transform_indices = @transform_10, window_bounds = array<i64: 1, 128>}, {transform_indices = @transform_11, window_bounds = array<i64: 8, 128>}]} {
    %c0 = arith.constant 0 : index
    %c0_0 = arith.constant 0 : index
    %0 = vector.load %arg1[%c0, %c0_0] : memref<8x128xf32, #tpu.memory_space<vmem>>, vector<8x128xf32>
    %c0_1 = arith.constant 0 : index
    %c0_2 = arith.constant 0 : index
    %1 = vector.load %arg2[%c0_1, %c0_2] : memref<128x256xf32, #tpu.memory_space<vmem>>, vector<128x256xf32>
    %cst = arith.constant dense<0.000000e+00> : vector<8x256xf32>
    %2 = tpu.matmul %0, %1, %cst {dimension_numbers = #tpu.dot_dimension_numbers<[1], [0], [0], [1], [0, 0, 1, 1], [], []>} : vector<8x128xf32>, vector<128x256xf32>, vector<8x256xf32> -> vector<8x256xf32>
    %c0_3 = arith.constant 0 : index
    %c0_4 = arith.constant 0 : index
    %3 = vector.load %arg3[%c0_3, %c0_4] : memref<1x256xf32, #tpu.memory_space<vmem>>, vector<1x256xf32>
    %4 = vector.broadcast %3 : vector<1x256xf32> to vector<8x256xf32>
    %5 = arith.addf %2, %4 : vector<8x256xf32>
    %cst_5 = arith.constant 0.000000e+00 : f32
    %6 = vector.broadcast %cst_5 : f32 to vector<8x256xf32>
    %7 = arith.maximumf %5, %6 : vector<8x256xf32>
    %c0_6 = arith.constant 0 : index
    %c0_7 = arith.constant 0 : index
    %8 = vector.load %arg4[%c0_6, %c0_7] : memref<256x128xf32, #tpu.memory_space<vmem>>, vector<256x128xf32>
    %cst_8 = arith.constant dense<0.000000e+00> : vector<8x128xf32>
    %9 = tpu.matmul %7, %8, %cst_8 {dimension_numbers = #tpu.dot_dimension_numbers<[1], [0], [0], [1], [0, 0, 1, 1], [], []>} : vector<8x256xf32>, vector<256x128xf32>, vector<8x128xf32> -> vector<8x128xf32>
    %c0_9 = arith.constant 0 : index
    %c0_10 = arith.constant 0 : index
    %10 = vector.load %arg5[%c0_9, %c0_10] : memref<1x128xf32, #tpu.memory_space<vmem>>, vector<1x128xf32>
    %11 = vector.broadcast %10 : vector<1x128xf32> to vector<8x128xf32>
    %12 = arith.addf %9, %11 : vector<8x128xf32>
    %cst_11 = arith.constant 0.000000e+00 : f32
    %13 = vector.broadcast %cst_11 : f32 to vector<8x128xf32>
    %14 = arith.maximumf %12, %13 : vector<8x128xf32>
    %c0_12 = arith.constant 0 : index
    %c0_13 = arith.constant 0 : index
    %15 = vector.load %arg6[%c0_12, %c0_13] : memref<128x128xf32, #tpu.memory_space<vmem>>, vector<128x128xf32>
    %cst_14 = arith.constant dense<0.000000e+00> : vector<8x128xf32>
    %16 = tpu.matmul %14, %15, %cst_14 {dimension_numbers = #tpu.dot_dimension_numbers<[1], [0], [0], [1], [0, 0, 1, 1], [], []>} : vector<8x128xf32>, vector<128x128xf32>, vector<8x128xf32> -> vector<8x128xf32>
    %c0_15 = arith.constant 0 : index
    %c0_16 = arith.constant 0 : index
    %17 = vector.load %arg7[%c0_15, %c0_16] : memref<1x128xf32, #tpu.memory_space<vmem>>, vector<1x128xf32>
    %18 = vector.broadcast %17 : vector<1x128xf32> to vector<8x128xf32>
    %19 = arith.addf %16, %18 : vector<8x128xf32>
    %cst_17 = arith.constant 0.000000e+00 : f32
    %20 = vector.broadcast %cst_17 : f32 to vector<8x128xf32>
    %21 = arith.maximumf %19, %20 : vector<8x128xf32>
    %c0_18 = arith.constant 0 : index
    %c0_19 = arith.constant 0 : index
    %22 = vector.load %arg8[%c0_18, %c0_19] : memref<128x128xf32, #tpu.memory_space<vmem>>, vector<128x128xf32>
    %cst_20 = arith.constant dense<0.000000e+00> : vector<8x128xf32>
    %23 = tpu.matmul %21, %22, %cst_20 {dimension_numbers = #tpu.dot_dimension_numbers<[1], [0], [0], [1], [0, 0, 1, 1], [], []>} : vector<8x128xf32>, vector<128x128xf32>, vector<8x128xf32> -> vector<8x128xf32>
    %c0_21 = arith.constant 0 : index
    %c0_22 = arith.constant 0 : index
    %24 = vector.load %arg9[%c0_21, %c0_22] : memref<1x128xf32, #tpu.memory_space<vmem>>, vector<1x128xf32>
    %25 = vector.broadcast %24 : vector<1x128xf32> to vector<8x128xf32>
    %26 = arith.addf %23, %25 : vector<8x128xf32>
    %cst_23 = arith.constant 0.000000e+00 : f32
    %27 = vector.broadcast %cst_23 : f32 to vector<8x128xf32>
    %28 = arith.maximumf %26, %27 : vector<8x128xf32>
    %c0_24 = arith.constant 0 : index
    %c0_25 = arith.constant 0 : index
    %29 = vector.load %arg10[%c0_24, %c0_25] : memref<128x128xf32, #tpu.memory_space<vmem>>, vector<128x128xf32>
    %cst_26 = arith.constant dense<0.000000e+00> : vector<8x128xf32>
    %30 = tpu.matmul %28, %29, %cst_26 {dimension_numbers = #tpu.dot_dimension_numbers<[1], [0], [0], [1], [0, 0, 1, 1], [], []>} : vector<8x128xf32>, vector<128x128xf32>, vector<8x128xf32> -> vector<8x128xf32>
    %c0_27 = arith.constant 0 : index
    %c0_28 = arith.constant 0 : index
    %31 = vector.load %arg11[%c0_27, %c0_28] : memref<1x128xf32, #tpu.memory_space<vmem>>, vector<1x128xf32>
    %32 = vector.broadcast %31 : vector<1x128xf32> to vector<8x128xf32>
    %33 = arith.addf %30, %32 : vector<8x128xf32>
    %c0_29 = arith.constant 0 : index
    %c0_30 = arith.constant 0 : index
    %34 = vector.load %arg12[%c0_29, %c0_30] : memref<8x128xf32, #tpu.memory_space<vmem>>, vector<8x128xf32>
    tpu.vector_store %arg12[%c0_29, %c0_30], %33 {strides = array<i32>} : memref<8x128xf32, #tpu.memory_space<vmem>>, vector<8x128xf32>,
    return
  }
  func.func @transform_0(%arg0: i32) -> (i32, i32) {
    %c0_i32 = arith.constant 0 : i32
    %c0_i32_0 = arith.constant 0 : i32
    return %arg0, %c0_i32 : i32, i32
  }
  func.func @transform_1(%arg0: i32) -> (i32, i32) {
    %c0_i32 = arith.constant 0 : i32
    %c0_i32_0 = arith.constant 0 : i32
    %c0_i32_1 = arith.constant 0 : i32
    return %c0_i32, %c0_i32_0 : i32, i32
  }
  func.func @transform_2(%arg0: i32) -> (i32, i32) {
    %c0_i32 = arith.constant 0 : i32
    %c0_i32_0 = arith.constant 0 : i32
    %c0_i32_1 = arith.constant 0 : i32
    return %c0_i32, %c0_i32_0 : i32, i32
  }
  func.func @transform_3(%arg0: i32) -> (i32, i32) {
    %c0_i32 = arith.constant 0 : i32
    %c0_i32_0 = arith.constant 0 : i32
    %c0_i32_1 = arith.constant 0 : i32
    return %c0_i32, %c0_i32_0 : i32, i32
  }
  func.func @transform_4(%arg0: i32) -> (i32, i32) {
    %c0_i32 = arith.constant 0 : i32
    %c0_i32_0 = arith.constant 0 : i32
    %c0_i32_1 = arith.constant 0 : i32
    return %c0_i32, %c0_i32_0 : i32, i32
  }
  func.func @transform_5(%arg0: i32) -> (i32, i32) {
    %c0_i32 = arith.constant 0 : i32
    %c0_i32_0 = arith.constant 0 : i32
    %c0_i32_1 = arith.constant 0 : i32
    return %c0_i32, %c0_i32_0 : i32, i32
  }
  func.func @transform_6(%arg0: i32) -> (i32, i32) {
    %c0_i32 = arith.constant 0 : i32
    %c0_i32_0 = arith.constant 0 : i32
    %c0_i32_1 = arith.constant 0 : i32
    return %c0_i32, %c0_i32_0 : i32, i32
  }
  func.func @transform_7(%arg0: i32) -> (i32, i32) {
    %c0_i32 = arith.constant 0 : i32
    %c0_i32_0 = arith.constant 0 : i32
    %c0_i32_1 = arith.constant 0 : i32
    return %c0_i32, %c0_i32_0 : i32, i32
  }
  func.func @transform_8(%arg0: i32) -> (i32, i32) {
    %c0_i32 = arith.constant 0 : i32
    %c0_i32_0 = arith.constant 0 : i32
    %c0_i32_1 = arith.constant 0 : i32
    return %c0_i32, %c0_i32_0 : i32, i32
  }
  func.func @transform_9(%arg0: i32) -> (i32, i32) {
    %c0_i32 = arith.constant 0 : i32
    %c0_i32_0 = arith.constant 0 : i32
    %c0_i32_1 = arith.constant 0 : i32
    return %c0_i32, %c0_i32_0 : i32, i32
  }
  func.func @transform_10(%arg0: i32) -> (i32, i32) {
    %c0_i32 = arith.constant 0 : i32
    %c0_i32_0 = arith.constant 0 : i32
    %c0_i32_1 = arith.constant 0 : i32
    return %c0_i32, %c0_i32_0 : i32, i32
  }
  func.func @transform_11(%arg0: i32) -> (i32, i32) {
    %c0_i32 = arith.constant 0 : i32
    %c0_i32_0 = arith.constant 0 : i32
    return %arg0, %c0_i32 : i32, i32
  }
}

</mosaic_0001>

<bundles_post_ra>
// kernel: tpu_custom_call.1
= control target key start
LH: loop header
LB: loop body
LE: loop exit
PB: predicated region body
PF: predicated region fallthrough
CT: control target
= control target key end

     0   :  { %16 = vsyncpa [#allocation3], 0  ;;  %s1372_s0 = inlined_call_operand.hbm [shape: f32[8,128], index: 0, kind: input, shape index: {}]   ;;  %s1373_s1 = inlined_call_operand.hbm [shape: f32[128,256], index: 1, kind: input, shape index: {}]   ;;  %s1374_s2 = inlined_call_operand.vmem [shape: f32[1,256], index: 2, kind: input, shape index: {}]   ;;  %s1375_s3 = inlined_call_operand.hbm [shape: f32[256,128], index: 3, kind: input, shape index: {}]   ;;  %s1376_s4 = inlined_call_operand.vmem [shape: f32[1,128], index: 4, kind: input, shape index: {}]   ;;  %s1377_s5 = inlined_call_operand.hbm [shape: f32[128,128], index: 5, kind: input, shape index: {}]   ;;  %s1378_s6 = inlined_call_operand.vmem [shape: f32[1,128], index: 6, kind: input, shape index: {}]   ;;  %s1379_s7 = inlined_call_operand.hbm [shape: f32[128,128], index: 7, kind: input, shape index: {}]   ;;  %s1380_s8 = inlined_call_operand.vmem [shape: f32[1,128], index: 8, kind: input, shape index: {}]   ;;  %s1381_s9 = inlined_call_operand.hbm [shape: f32[128,128], index: 9, kind: input, shape index: {}]   ;;  %s1382_s10 = inlined_call_operand.vmem [shape: f32[1,128], index: 10, kind: input, shape index: {}]   ;;  %s1383_s11 = inlined_call_operand.hbm [shape: f32[8,128], index: 11, kind: output, shape index: {}]  }
   0x1   :  { %17 = vsyncpa [#allocation6], 0 }
   0x2   :  { %18 = vsyncpa [#allocation9], 0 }
   0x3   :  { %19 = vsyncpa [#allocation12], 0 }
   0x4   :  { %20 = vsyncpa [#allocation4], 0  ;;  %s1156_s17 = smov [#allocation5]   ;;  %s992_s21 = scalar_lea.hbm %s1373_s1, 4096 }
   0x5   :  { %s36_s18 = sshll.u32 %s1156_s17, 4  ;;  %p993_p0 = scmp.ne.s32.totalorder %s1373_s1, %s992_s21  ;;  %s37_s18 = int_to_ptr.vmem [resolvable:$true] %s36_s18 }
   0x6   :  { %p996_p1 = scmp.lt.u32.totalorder %s992_s21, %s1373_s1 }
   0x8   :  { %p998_p2 = pnand %p996_p1, %p993_p0 }
   0xa   :  { %1001 = shalt.err (!%p998_p2)
}
   0xb   :  { %s1002_s26 = scalar_lea.vmem %s37_s18, 4096  ;;  %p1007_p4 = scmp.lt.s32.totalorder %s37_s18, %s37_s18 }
   0xc   :  { %p1003_p3 = scmp.ne.s32.totalorder %s37_s18, %s1002_s26  ;;  %p1008_p5 = scmp.lt.s32.totalorder %s1002_s26, %s1002_s26 }
   0xe   :  { %p1009_p6 = por %p1008_p5, %p1007_p4 }
  0x10   :  { %p1010_p7 = pnand %p1009_p6, %p1003_p3 }
  0x12   :  { %1013 = shalt.err (!%p1010_p7)
}
  0x13   :  { %s1157_s27 = smov 256   ;;  %s1158_s28 = smov 16  }
  0x14   :  { %42 = dma.hbm_to_vmem [thread:$0]  %s1373_s1, 4096, %s37_s18, [#allocation6], %s1157_s27, %s1157_s27, %s1158_s28  }
  0x15   :  { %s1159_s12 = smov [#allocation8]   ;;  %s1160_s14 = smov [#allocation2]  }
  0x16   :  { %s64_s13 = sshll.u32 %s1159_s12, 4  ;;  %s27_s15 = sshll.u32 %s1160_s14, 4  ;;  %s65_s13 = int_to_ptr.vmem [resolvable:$true] %s64_s13  ;;  %s28_s15 = int_to_ptr.vmem [resolvable:$true] %s27_s15 }
  0x17   :  { %s1014_s19 = scalar_lea.hbm %s1377_s5, 2048 }
  0x18   :  { %p1015_p8 = scmp.ne.s32.totalorder %s1377_s5, %s1014_s19  ;;  %p1018_p9 = scmp.lt.u32.totalorder %s1014_s19, %s1377_s5 }
  0x1a   :  { %p1020_p10 = pnand %p1018_p9, %p1015_p8 }
  0x1c   :  { %1023 = shalt.err (!%p1020_p10)
}
  0x1d   :  { %s1024_s1 = scalar_lea.vmem %s65_s13, 2048  ;;  %p1029_p12 = scmp.lt.s32.totalorder %s65_s13, %s65_s13 }
  0x1e   :  { %p1025_p11 = scmp.ne.s32.totalorder %s65_s13, %s1024_s1  ;;  %p1030_p13 = scmp.lt.s32.totalorder %s1024_s1, %s1024_s1 }
  0x20   :  { %p1031_p0 = por %p1030_p13, %p1029_p12 }
  0x22   :  { %p1032_p1 = pnand %p1031_p0, %p1025_p11 }
  0x24   :  { %1035 = shalt.err (!%p1032_p1)
}
  0x25   :  { %s1161_s18 = smov 128   ;;  %s1162_s24 = smov 8  }
  0x26   :  { %70 = dma.hbm_to_vmem [thread:$0]  %s1377_s5, 2048, %s65_s13, [#allocation9], %s1161_s18, %s1161_s18, %s1162_s24  }
  0x27   :  { %s1036_s29 = scalar_lea.hbm %s1372_s0, 128 }
  0x28   :  { %p1037_p2 = scmp.ne.s32.totalorder %s1372_s0, %s1036_s29  ;;  %p1040_p3 = scmp.lt.u32.totalorder %s1036_s29, %s1372_s0 }
  0x2a   :  { %p1042_p4 = pnand %p1040_p3, %p1037_p2 }
  0x2c   :  { %1045 = shalt.err (!%p1042_p4)
}
  0x2d   :  { %s1046_s17 = scalar_lea.vmem %s28_s15, 128  ;;  %p1051_p6 = scmp.lt.s32.totalorder %s28_s15, %s28_s15 }
  0x2e   :  { %p1047_p5 = scmp.ne.s32.totalorder %s28_s15, %s1046_s17  ;;  %p1052_p7 = scmp.lt.s32.totalorder %s1046_s17, %s1046_s17 }
  0x30   :  { %p1053_p8 = por %p1052_p7, %p1051_p6 }
  0x32   :  { %p1054_p9 = pnand %p1053_p8, %p1047_p5 }
  0x34   :  { %1057 = shalt.err (!%p1054_p9)
}
  0x35   :  { %30 = dma.hbm_to_vmem [thread:$0]  %s1372_s0, 128, %s28_s15, [#allocation3]  }
  0x36   :  { %s1163_s19 = smov [#allocation7]   ;;  %s1164_s21 = smov [#allocation10]  }
  0x37   :  { %s50_s20 = sshll.u32 %s1163_s19, 4  ;;  %s78_s22 = sshll.u32 %s1164_s21, 4  ;;  %s51_s20 = int_to_ptr.vmem [resolvable:$true] %s50_s20  ;;  %s79_s22 = int_to_ptr.vmem [resolvable:$true] %s78_s22 }
  0x38   :  { %s1058_s25 = scalar_lea.hbm %s1375_s3, 4096 }
  0x39   :  { %p1059_p10 = scmp.ne.s32.totalorder %s1375_s3, %s1058_s25  ;;  %p1062_p11 = scmp.lt.u32.totalorder %s1058_s25, %s1375_s3 }
  0x3b   :  { %p1064_p12 = pnand %p1062_p11, %p1059_p10 }
  0x3d   :  { %1067 = shalt.err (!%p1064_p12)
}
  0x3e   :  { %s1068_s0 = scalar_lea.vmem %s51_s20, 4096  ;;  %p1073_p0 = scmp.lt.s32.totalorder %s51_s20, %s51_s20 }
  0x3f   :  { %p1069_p13 = scmp.ne.s32.totalorder %s51_s20, %s1068_s0  ;;  %p1074_p1 = scmp.lt.s32.totalorder %s1068_s0, %s1068_s0 }
  0x41   :  { %p1075_p2 = por %p1074_p1, %p1073_p0 }
  0x43   :  { %p1076_p3 = pnand %p1075_p2, %p1069_p13 }
  0x45   :  { %1079 = shalt.err (!%p1076_p3)
}
  0x46   :  { %56 = dma.hbm_to_vmem [thread:$0]  %s1375_s3, 4096, %s51_s20, [#allocation6], %s1161_s18, %s1161_s18, %s1162_s24  }
  0x47   :  { %s1080_s16 = scalar_lea.hbm %s1379_s7, 2048 }
  0x48   :  { %p1081_p4 = scmp.ne.s32.totalorder %s1379_s7, %s1080_s16  ;;  %p1084_p5 = scmp.lt.u32.totalorder %s1080_s16, %s1379_s7 }
  0x4a   :  { %p1086_p6 = pnand %p1084_p5, %p1081_p4 }
  0x4c   :  { %1089 = shalt.err (!%p1086_p6)
}
  0x4d   :  { %s1090_s21 = scalar_lea.vmem %s79_s22, 2048  ;;  %p1095_p8 = scmp.lt.s32.totalorder %s79_s22, %s79_s22 }
  0x4e   :  { %p1091_p7 = scmp.ne.s32.totalorder %s79_s22, %s1090_s21  ;;  %p1096_p9 = scmp.lt.s32.totalorder %s1090_s21, %s1090_s21 }
  0x50   :  { %p1097_p10 = por %p1096_p9, %p1095_p8 }
  0x52   :  { %p1098_p11 = pnand %p1097_p10, %p1091_p7 }
  0x54   :  { %1101 = shalt.err (!%p1098_p11)
}
  0x55   :  { %84 = dma.hbm_to_vmem [thread:$0]  %s1379_s7, 2048, %s79_s22, [#allocation9], %s1161_s18, %s1161_s18, %s1162_s24  }
  0x56   :  { %s1165_s23 = smov [#allocation11]   ;;  %s1102_s27 = scalar_lea.hbm %s1381_s9, 2048 }
  0x57   :  { %s92_s1 = sshll.u32 %s1165_s23, 4  ;;  %p1103_p12 = scmp.ne.s32.totalorder %s1381_s9, %s1102_s27  ;;  %s93_s1 = int_to_ptr.vmem [resolvable:$true] %s92_s1 }
  0x58   :  { %p1106_p13 = scmp.lt.u32.totalorder %s1102_s27, %s1381_s9 }
  0x5a   :  { %p1108_p0 = pnand %p1106_p13, %p1103_p12 }
  0x5c   :  { %1111 = shalt.err (!%p1108_p0)
}
  0x5d   :  { %s1112_s30 = scalar_lea.vmem %s93_s1, 2048  ;;  %p1117_p2 = scmp.lt.s32.totalorder %s93_s1, %s93_s1 }
  0x5e   :  { %p1113_p1 = scmp.ne.s32.totalorder %s93_s1, %s1112_s30  ;;  %p1118_p3 = scmp.lt.s32.totalorder %s1112_s30, %s1112_s30 }
  0x60   :  { %p1119_p4 = por %p1118_p3, %p1117_p2 }
  0x62   :  { %p1120_p5 = pnand %p1119_p4, %p1113_p1 }
  0x64   :  { %1123 = shalt.err (!%p1120_p5)
}
  0x65   :  { %98 = dma.hbm_to_vmem [thread:$0]  %s1381_s9, 2048, %s93_s1, [#allocation12], %s1161_s18, %s1161_s18, %s1162_s24  }
  0x66   :  { %1146 = dma.done.wait [#allocation3], 128  }
  0x67   :  { %1147 = vsyncadd [#allocation3], 4294967168 }
  0x68   :  { %1148 = dma.done.wait [#allocation6], 8192  }
  0x69   :  { %1149 = vsyncadd [#allocation6], 4294959104 }
  0x6a   :  { %1150 = dma.done.wait [#allocation9], 4096  }
  0x6b   :  { %1151 = vsyncadd [#allocation9], 4294963200 }
  0x6c   :  { %1152 = dma.done.wait [#allocation12], 2048  }
  0x6d   :  { %1153 = vsyncadd [#allocation12], 4294965248  ;;  %v1166_v0 = vmov 0.0   ;;  %v121_v1 = vld [vmem:[#allocation5 + $0x8] sm:$0xff]  ;;  %v123_v2 = vld [vmem:[#allocation5 + $0x18] sm:$0xff]  ;;  %vm1168_vm0 = vmmov 0  }
  0x6e   :  { %228 = vmatprep.mubr.f32.mxu0 %v1166_v0  ;;  %v120_v3 = vld [vmem:[#allocation5] sm:$0xff]  ;;  %v842_v4 = vpack.c.bf16 %v123_v2, %v121_v1  ;;  %v122_v5 = vld [vmem:[#allocation5 + $0x10] sm:$0xff]  ;;  %v125_v6 = vld [vmem:[#allocation5 + $0x28] sm:$0xff]  ;;  %s1169_s5 = smov [#allocation13]  }
  0x6f   :  { %v127_v7 = vld [vmem:[#allocation5 + $0x38] sm:$0xff]  ;;  %v844_v8 = vpack.c.bf16 %v122_v5, %v120_v3  ;;  %v124_v10 = vld [vmem:[#allocation5 + $0x20] sm:$0xff]  ;;  %v126_v11 = vld [vmem:[#allocation5 + $0x30] sm:$0xff]  ;;  %s635_s13 = sshll.u32 %s1169_s5, 4  ;;  %s636_s13 = int_to_ptr.vmem [resolvable:$true] %s635_s13 }
  0x70   :  { %v846_v9 = vpack.c.bf16 %v127_v7, %v125_v6  ;;  %v129_v12 = vld [vmem:[#allocation5 + $0x48] sm:$0xff]  ;;  %843 = vmatprep.subr.bf16.mxu0 %v842_v4  ;;  %v131_v13 = vld [vmem:[#allocation5 + $0x58] sm:$0xff]  ;;  %v848_v14 = vpack.c.bf16 %v126_v11, %v124_v10  ;;  %v128_v16 = vld [vmem:[#allocation5 + $0x40] sm:$0xff]  ;;  %s1124_s19 = scalar_lea.vmem %s636_s13, 128  ;;  %p1129_p7 = scmp.lt.s32.totalorder %s636_s13, %s636_s13 }
  0x71   :  { %845 = vmatpush1.bf16.msra.mxu0 %v844_v8  ;;  %v850_v15 = vpack.c.bf16 %v131_v13, %v129_v12  ;;  %v130_v17 = vld [vmem:[#allocation5 + $0x50] sm:$0xff]  ;;  %v133_v18 = vld [vmem:[#allocation5 + $0x68] sm:$0xff]  ;;  %v135_v19 = vld [vmem:[#allocation5 + $0x78] sm:$0xff]  ;;  %p1125_p6 = scmp.ne.s32.totalorder %s636_s13, %s1124_s19  ;;  %p1130_p8 = scmp.lt.s32.totalorder %s1124_s19, %s1124_s19 }
  0x72   :  { %847 = vmatprep.subr.bf16.mxu0 %v846_v9  ;;  %v852_v20 = vpack.c.bf16 %v130_v17, %v128_v16  ;;  %v854_v21 = vpack.c.bf16 %v135_v19, %v133_v18  ;;  %v132_v22 = vld [vmem:[#allocation5 + $0x60] sm:$0xff]  ;;  %v134_v23 = vld [vmem:[#allocation5 + $0x70] sm:$0xff]  ;;  %v137_v24 = vld [vmem:[#allocation5 + $0x88] sm:$0xff] }
  0x73   :  { %v139_v25 = vld [vmem:[#allocation5 + $0x98] sm:$0xff]  ;;  %v136_v26 = vld [vmem:[#allocation5 + $0x80] sm:$0xff]  ;;  %v138_v27 = vld [vmem:[#allocation5 + $0x90] sm:$0xff]  ;;  %v856_v31 = vpack.c.bf16 %v134_v23, %v132_v22  ;;  %p1131_p9 = por %p1130_p8, %p1129_p7 }
  0x74   :  { %v253_v28 = vld [vmem:[#allocation7 + $0x80] sm:$0xff]  ;;  %v254_v29 = vld [vmem:[#allocation7 + $0x88] sm:$0xff]  ;;  %v255_v34 = vld [vmem:[#allocation7 + $0x90] sm:$0xff]  ;;  %v858_v36 = vpack.c.bf16 %v139_v25, %v137_v24  ;;  %v860_v46 = vpack.c.bf16 %v138_v27, %v136_v26 }
  0x75   :  { %849 = vmatpush1.bf16.msra.mxu0 %v848_v14  ;;  %v237_v30 = vld [vmem:[#allocation7] sm:$0xff]  ;;  %v874_v32 = vpack.c.bf16 %v254_v29, %v253_v28  ;;  %v238_v33 = vld [vmem:[#allocation7 + $0x8] sm:$0xff]  ;;  %v256_v35 = vld [vmem:[#allocation7 + $0x98] sm:$0xff]  ;;  %p1132_p10 = pnand %p1131_p9, %p1125_p6 }
  0x76   :  { %851 = vmatprep.subr.bf16.mxu0 %v850_v15  ;;  %v876_v37 = vpack.c.bf16 %v238_v33, %v237_v30  ;;  %v878_v38 = vpack.c.bf16 %v256_v35, %v255_v34  ;;  %v239_v39 = vld [vmem:[#allocation7 + $0x10] sm:$0xff]  ;;  %v240_v40 = vld [vmem:[#allocation7 + $0x18] sm:$0xff]  ;;  %v257_v41 = vld [vmem:[#allocation7 + $0xa0] sm:$0xff] }
  0x77   :  { %v141_v42 = vld [vmem:[#allocation5 + $0xa8] sm:$0xff]  ;;  %v143_v43 = vld [vmem:[#allocation5 + $0xb8] sm:$0xff]  ;;  %875 = vmatprep.subr.bf16.mxu1 %v874_v32  ;;  %v880_v45 = vpack.c.bf16 %v240_v40, %v239_v39  ;;  %v140_v47 = vld [vmem:[#allocation5 + $0xa0] sm:$0xff] }
  0x78   :  { %v258_v44 = vld [vmem:[#allocation7 + $0xa8] sm:$0xff]  ;;  %877 = vmatpush3.bf16.msra.mxu1 %v876_v37  ;;  %v241_v49 = vld [vmem:[#allocation7 + $0x20] sm:$0xff]  ;;  %v862_v51 = vpack.c.bf16 %v143_v43, %v141_v42  ;;  %v142_v52 = vld [vmem:[#allocation5 + $0xb0] sm:$0xff] }
  0x79   :  { %853 = vmatpush1.bf16.msra.mxu0 %v852_v20  ;;  %879 = vmatprep.subr.bf16.mxu1 %v878_v38  ;;  %v882_v48 = vpack.c.bf16 %v258_v44, %v257_v41  ;;  %v242_v50 = vld [vmem:[#allocation7 + $0x28] sm:$0xff]  ;;  %v259_v53 = vld [vmem:[#allocation7 + $0xb0] sm:$0xff]  ;;  %v260_v54 = vld [vmem:[#allocation7 + $0xb8] sm:$0xff]  ;;  %v864_v58 = vpack.c.bf16 %v142_v52, %v140_v47  ;;  %v1167_v38 = vmov 0.0|0.0  }
  0x7a   :  { %855 = vmatprep.subr.bf16.mxu0 %v854_v21  ;;  %v145_v55 = vld [vmem:[#allocation5 + $0xc8] sm:$0xff]  ;;  %v147_v56 = vld [vmem:[#allocation5 + $0xd8] sm:$0xff]  ;;  %v884_v57 = vpack.c.bf16 %v242_v50, %v241_v49  ;;  %v144_v59 = vld [vmem:[#allocation5 + $0xc0] sm:$0xff]  ;;  %v886_v60 = vpack.c.bf16 %v260_v54, %v259_v53  ;;  %v154_v54 = vlaneseq }
  0x7b   :  { %v243_v61 = vld [vmem:[#allocation7 + $0x30] sm:$0xff]  ;;  %v244_v62 = vld [vmem:[#allocation7 + $0x38] sm:$0xff]  ;;  %v866_v63 = vpack.c.bf16 %v147_v56, %v145_v55  ;;  %v261_v2 = vld [vmem:[#allocation7 + $0xc0] sm:$0xff] }
  0x7c   :  { %881 = vmatpush3.bf16.msra.mxu1 %v880_v45  ;;  %v146_v1 = vld [vmem:[#allocation5 + $0xd0] sm:$0xff]  ;;  %v262_v3 = vld [vmem:[#allocation7 + $0xc8] sm:$0xff]  ;;  %v151_v5 = vld [vmem:[#allocation5 + $0xf8] sm:$0xff]  ;;  %v888_v6 = vpack.c.bf16 %v244_v62, %v243_v61  ;;  %v155_v55 = vshrl.u32 %v154_v54, 7 }
  0x7d   :  { %857 = vmatpush1.bf16.msra.mxu0 %v856_v31  ;;  %883 = vmatprep.subr.bf16.mxu1 %v882_v48  ;;  %v149_v4 = vld [vmem:[#allocation5 + $0xe8] sm:$0xff]  ;;  %v868_v7 = vpack.c.bf16 %v146_v1, %v144_v59  ;;  %v148_v8 = vld [vmem:[#allocation5 + $0xe0] sm:$0xff]  ;;  %v890_v9 = vpack.c.bf16 %v262_v3, %v261_v2  ;;  %v150_v13 = vld [vmem:[#allocation5 + $0xf0] sm:$0xff] }
  0x7e   :  { %859 = vmatprep.subr.bf16.mxu0 %v858_v36  ;;  %v245_v10 = vld [vmem:[#allocation7 + $0x40] sm:$0xff]  ;;  %v246_v11 = vld [vmem:[#allocation7 + $0x48] sm:$0xff]  ;;  %v870_v12 = vpack.c.bf16 %v151_v5, %v149_v4  ;;  %v263_v14 = vld [vmem:[#allocation7 + $0xd0] sm:$0xff]  ;;  %v872_v17 = vpack.c.bf16 %v150_v13, %v148_v8  ;;  %v156_v56 = vsub.s32 0, %v155_v55 }
  0x7f   :  { %v264_v15 = vld [vmem:[#allocation7 + $0xd8] sm:$0xff]  ;;  %v892_v16 = vpack.c.bf16 %v246_v11, %v245_v10  ;;  %v247_v19 = vld [vmem:[#allocation7 + $0x50] sm:$0xff]  ;;  %v265_v21 = vld [vmem:[#allocation7 + $0xe0] sm:$0xff] }
  0x80   :  { %885 = vmatpush3.bf16.msra.mxu1 %v884_v57  ;;  %v894_v18 = vpack.c.bf16 %v264_v15, %v263_v14  ;;  %v248_v20 = vld [vmem:[#allocation7 + $0x58] sm:$0xff]  ;;  %v266_v22 = vld [vmem:[#allocation7 + $0xe8] sm:$0xff]  ;;  %v249_v26 = vld [vmem:[#allocation7 + $0x60] sm:$0xff] }
  0x81   :  { %861 = vmatpush1.bf16.msra.mxu0 %v860_v46  ;;  %887 = vmatprep.subr.bf16.mxu1 %v886_v60  ;;  %v896_v23 = vpack.c.bf16 %v248_v20, %v247_v19  ;;  %v119_v24 = vld [vmem:[#allocation2] sm:$0xff]  ;;  %v898_v25 = vpack.c.bf16 %v266_v22, %v265_v21  ;;  %v250_v27 = vld [vmem:[#allocation7 + $0x68] sm:$0xff]  ;;  %v267_v29 = vld [vmem:[#allocation7 + $0xf0] sm:$0xff] }
  0x82   :  { %863 = vmatprep.subr.bf16.mxu0 %v862_v51  ;;  %v900_v28 = vpack.c.bf16 %v250_v27, %v249_v26  ;;  %v268_v30 = vld [vmem:[#allocation7 + $0xf8] sm:$0xff]  ;;  %v251_v32 = vld [vmem:[#allocation7 + $0x70] sm:$0xff]  ;;  %v347_v35 = vld [vmem:[#allocation8] sm:$0xff] }
  0x83   :  { %v902_v31 = vpack.c.bf16 %v268_v30, %v267_v29  ;;  %v252_v33 = vld [vmem:[#allocation7 + $0x78] sm:$0xff]  ;;  %v348_v36 = vld [vmem:[#allocation8 + $0x8] sm:$0xff]  ;;  %v349_v37 = vld [vmem:[#allocation8 + $0x10] sm:$0xff] }
  0x84   :  { %889 = vmatpush3.bf16.msra.mxu1 %v888_v6  ;;  %v904_v34 = vpack.c.bf16 %v252_v33, %v251_v32  ;;  %v907_v39 = vpack.c.bf16 %v348_v36, %v347_v35  ;;  %v350_v40 = vld [vmem:[#allocation8 + $0x18] sm:$0xff]  ;;  %v351_v42 = vld [vmem:[#allocation8 + $0x20] sm:$0xff]  ;;  %v352_v43 = vld [vmem:[#allocation8 + $0x28] sm:$0xff] }
  0x85   :  { %865 = vmatpush1.bf16.msra.mxu0 %v864_v58  ;;  %891 = vmatprep.subr.bf16.mxu1 %v890_v9  ;;  %v910_v41 = vpack.c.bf16 %v350_v40, %v349_v37  ;;  %v913_v44 = vpack.c.bf16 %v352_v43, %v351_v42  ;;  %v353_v45 = vld [vmem:[#allocation8 + $0x30] sm:$0xff]  ;;  %v354_v46 = vld [vmem:[#allocation8 + $0x38] sm:$0xff]  ;;  %v355_v48 = vld [vmem:[#allocation8 + $0x40] sm:$0xff]  ;;  %v160_v58 = vsub.s32 1, %v155_v55 }
  0x86   :  { %867 = vmatprep.subr.bf16.mxu0 %v866_v63  ;;  %v916_v47 = vpack.c.bf16 %v354_v46, %v353_v45  ;;  %v356_v49 = vld [vmem:[#allocation8 + $0x48] sm:$0xff]  ;;  %v357_v51 = vld [vmem:[#allocation8 + $0x50] sm:$0xff]  ;;  %v358_v52 = vld [vmem:[#allocation8 + $0x58] sm:$0xff] }
  0x87   :  { %v919_v50 = vpack.c.bf16 %v356_v49, %v355_v48  ;;  %v922_v53 = vpack.c.bf16 %v358_v52, %v357_v51  ;;  %v152_v57 = vld [vmem:[%s1374_s2] sm:$0x3]  ;;  %v359_v4 = vld [vmem:[#allocation8 + $0x60] sm:$0xff]  ;;  %v360_v5 = vld [vmem:[#allocation8 + $0x68] sm:$0xff] }
  0x88   :  { %893 = vmatpush3.bf16.msra.mxu1 %v892_v16  ;;  %v157_v59 = vrot.slane %v152_v57, %v156_v56  ;;  %v161_v60 = vrot.slane %v152_v57, %v160_v58  ;;  %v925_v6 = vpack.c.bf16 %v360_v5, %v359_v4  ;;  %v362_v8 = vld [vmem:[#allocation8 + $0x78] sm:$0xff]  ;;  %v441_v10 = vld [vmem:[#allocation10] sm:$0xff]  ;;  %v442_v11 = vld [vmem:[#allocation10 + $0x8] sm:$0xff] }
  0x89   :  { %869 = vmatpush1.bf16.msra.mxu0 %v868_v7  ;;  %895 = vmatprep.subr.bf16.mxu1 %v894_v18  ;;  %v361_v7 = vld [vmem:[#allocation8 + $0x70] sm:$0xff]  ;;  %v931_v13 = vpack.c.bf16 %v442_v11, %v441_v10  ;;  %v444_v14 = vld [vmem:[#allocation10 + $0x18] sm:$0xff]  ;;  %v445_v16 = vld [vmem:[#allocation10 + $0x20] sm:$0xff] }
  0x8a   :  { %871 = vmatprep.subr.bf16.mxu0 %v870_v12  ;;  %v928_v9 = vpack.c.bf16 %v362_v8, %v361_v7  ;;  %v443_v12 = vld [vmem:[#allocation10 + $0x10] sm:$0xff]  ;;  %v448_v20 = vld [vmem:[#allocation10 + $0x38] sm:$0xff]  ;;  %v449_v22 = vld [vmem:[#allocation10 + $0x40] sm:$0xff] }
  0x8b   :  { %v934_v15 = vpack.c.bf16 %v444_v14, %v443_v12  ;;  %v447_v19 = vld [vmem:[#allocation10 + $0x30] sm:$0xff]  ;;  %v452_v26 = vld [vmem:[#allocation10 + $0x58] sm:$0xff]  ;;  %v454_v29 = vld [vmem:[#allocation10 + $0x68] sm:$0xff] }
  0x8c   :  { %897 = vmatpush3.bf16.msra.mxu1 %v896_v23  ;;  %v940_v21 = vpack.c.bf16 %v448_v20, %v447_v19  ;;  %v450_v23 = vld [vmem:[#allocation10 + $0x48] sm:$0xff]  ;;  %v647_v32 = vld [vmem:[%s1376_s4] ss:$0 sm:$0xff]  ;;  %v455_v37 = vld [vmem:[#allocation10 + $0x70] sm:$0xff] }
  0x8d   :  { %873 = vmatpush1.bf16.msra.mxu0 %v872_v17  ;;  %899 = vmatprep.subr.bf16.mxu1 %v898_v25  ;;  %v446_v17 = vld [vmem:[#allocation10 + $0x28] sm:$0xff]  ;;  %v451_v25 = vld [vmem:[#allocation10 + $0x50] sm:$0xff]  ;;  %v538_v45 = vld [vmem:[#allocation11 + $0x18] sm:$0xff] }
  0x8e   :  { %906 = vmatprep.subr.bf16.mxu0 %v1167_v38  ;;  %v937_v18 = vpack.c.bf16 %v446_v17, %v445_v16  ;;  %v946_v27 = vpack.c.bf16 %v452_v26, %v451_v25  ;;  %v536_v42 = vld [vmem:[#allocation11 + $0x8] sm:$0xff]  ;;  %v537_v43 = vld [vmem:[#allocation11 + $0x10] sm:$0xff]  ;;  %v543_v52 = vld [vmem:[#allocation11 + $0x40] sm:$0xff] }
  0x8f   :  { %v958_v46 = vpack.c.bf16 %v538_v45, %v537_v43  ;;  %v540_v48 = vld [vmem:[#allocation11 + $0x28] sm:$0xff]  ;;  %v545_v55 = vld [vmem:[#allocation11 + $0x50] sm:$0xff]  ;;  %v546_v56 = vld [vmem:[#allocation11 + $0x58] sm:$0xff] }
  0x90   :  { %229 = vmatmul.mubr.f32.vlgmr.msra.gmra.mrb[0].mxu0 %v119_v24  ;;  %901 = vmatpush3.bf16.msra.mxu1 %v900_v28  ;;  %v943_v24 = vpack.c.bf16 %v450_v23, %v449_v22  ;;  %v453_v28 = vld [vmem:[#allocation10 + $0x60] sm:$0xff]  ;;  %v970_v57 = vpack.c.bf16 %v546_v56, %v545_v55  ;;  %v550_v4 = vld [vmem:[#allocation11 + $0x78] sm:$0xff] }
  0x91   :  { %903 = vmatprep.subr.bf16.mxu1 %v902_v31  ;;  %908 = vmatpush3.bf16.msra.mxu0 %v907_v39  ;;  %v949_v30 = vpack.c.bf16 %v454_v29, %v453_v28  ;;  %v456_v39 = vld [vmem:[#allocation10 + $0x78] sm:$0xff]  ;;  %v547_v58 = vld [vmem:[#allocation11 + $0x60] sm:$0xff] }
  0x92   :  { %909 = vmatprep.subr.bf16.mxu0 %v1167_v38  ;;  %769 = vmatprep.mubr.msk.f32.mxu0 %vm1168_vm0, %v1166_v0  ;;  %v952_v40 = vpack.c.bf16 %v456_v39, %v455_v37  ;;  %v650_v10 = vld [vmem:[%s1382_s10] ss:$0 sm:$0xff] }
  0x94   :  { %905 = vmatpush3.bf16.msra.mxu1 %v904_v34 }
  0x95   :  { %930 = vmatprep.subr.bf16.mxu1 %v1167_v38  ;;  %911 = vmatpush3.bf16.msra.mxu0 %v910_v41  ;;  %v535_v41 = vld [vmem:[#allocation11] sm:$0xff] }
  0x96   :  { %912 = vmatprep.subr.bf16.mxu0 %v1167_v38 }
  0x99   :  { %914 = vmatpush3.bf16.msra.mxu0 %v913_v44  ;;  %v955_v44 = vpack.c.bf16 %v536_v42, %v535_v41 }
  0x9a   :  { %915 = vmatprep.subr.bf16.mxu0 %v1167_v38 }
  0x9d   :  { %917 = vmatpush3.bf16.msra.mxu0 %v916_v47  ;;  %v539_v47 = vld [vmem:[#allocation11 + $0x20] sm:$0xff] }
  0x9e   :  { %918 = vmatprep.subr.bf16.mxu0 %v1167_v38  ;;  %v961_v49 = vpack.c.bf16 %v540_v48, %v539_v47 }
  0xa1   :  { %920 = vmatpush3.bf16.msra.mxu0 %v919_v50  ;;  %v542_v50 = vld [vmem:[#allocation11 + $0x38] sm:$0xff] }
  0xa2   :  { %921 = vmatprep.subr.bf16.mxu0 %v1167_v38 }
  0xa5   :  { %923 = vmatpush3.bf16.msra.mxu0 %v922_v53  ;;  %v544_v53 = vld [vmem:[#allocation11 + $0x48] sm:$0xff] }
  0xa6   :  { %924 = vmatprep.subr.bf16.mxu0 %v1167_v38  ;;  %v967_v54 = vpack.c.bf16 %v544_v53, %v543_v52 }
  0xa9   :  { %926 = vmatpush3.bf16.msra.mxu0 %v925_v6  ;;  %v649_v6 = vld [vmem:[%s1380_s8] ss:$0 sm:$0xff] }
  0xaa   :  { %927 = vmatprep.subr.bf16.mxu0 %v1167_v38 }
  0xad   :  { %929 = vmatpush3.bf16.msra.mxu0 %v928_v9 }
  0xae   :  { %954 = vmatprep.subr.bf16.mxu0 %v1167_v38 }
 0x163   :  { %v230_v61 = vpop.f32.mrb[0].mxu0 }
 0x164   :  { %v231_v62 = vadd.f32 %v230_v61, %v157_v59  ;;  %v232_v63 = vpop.f32.mrb[1].mxu0  ;;  %v548_v59 = vld [vmem:[#allocation11 + $0x68] sm:$0xff]  ;;  %v648_v61 = vld [vmem:[%s1378_s6] ss:$0 sm:$0xff] }
 0x165   :  { %v233_v1 = vadd.f32 %v232_v63, %v161_v60  ;;  %v973_v60 = vpack.c.bf16 %v548_v59, %v547_v58 }
 0x166   :  { %v235_v3 = vmax.f32 %v231_v62, 0.0 }
 0x167   :  { %v236_v2 = vmax.f32 %v233_v1, 0.0 }
 0x169   :  { %340 = vmatprep.mubr.f32.mxu1 %v236_v2 }
 0x16a   :  { %341 = vmatmul.mubr.f32.vlgmr.msra.gmra.mrb[0].mxu1 %v235_v3  ;;  %v549_v3 = vld [vmem:[#allocation11 + $0x70] sm:$0xff] }
 0x16b   :  { %804 = vmatprep.mubr.msk.f32.mxu1 %vm1168_vm0, %v1166_v0  ;;  %932 = vmatpush3.bf16.msra.mxu1 %v931_v13  ;;  %v976_v5 = vpack.c.bf16 %v550_v4, %v549_v3 }
 0x16c   :  { %933 = vmatprep.subr.bf16.mxu1 %v1167_v38 }
 0x16f   :  { %935 = vmatpush3.bf16.msra.mxu1 %v934_v15 }
 0x170   :  { %936 = vmatprep.subr.bf16.mxu1 %v1167_v38 }
 0x173   :  { %938 = vmatpush3.bf16.msra.mxu1 %v937_v18 }
 0x174   :  { %939 = vmatprep.subr.bf16.mxu1 %v1167_v38 }
 0x177   :  { %941 = vmatpush3.bf16.msra.mxu1 %v940_v21 }
 0x178   :  { %942 = vmatprep.subr.bf16.mxu1 %v1167_v38 }
 0x17b   :  { %944 = vmatpush3.bf16.msra.mxu1 %v943_v24 }
 0x17c   :  { %945 = vmatprep.subr.bf16.mxu1 %v1167_v38 }
 0x17f   :  { %947 = vmatpush3.bf16.msra.mxu1 %v946_v27 }
 0x180   :  { %948 = vmatprep.subr.bf16.mxu1 %v1167_v38 }
 0x183   :  { %950 = vmatpush3.bf16.msra.mxu1 %v949_v30 }
 0x184   :  { %951 = vmatprep.subr.bf16.mxu1 %v1167_v38 }
 0x187   :  { %953 = vmatpush3.bf16.msra.mxu1 %v952_v40 }
 0x23d   :  { %v683_v31 = vpop.f32.mrb[0].mxu1 }
 0x23e   :  { %v684_v33 = vpop.f32.mrb[1].mxu1 }
 0x23f   :  { %v685_v34 = vadd.f32 %v684_v33, %v683_v31 }
 0x241   :  { %v343_v35 = vadd.f32 %v685_v34, %v647_v32 }
 0x243   :  { %v346_v36 = vmax.f32 %v343_v35, 0.0 }
 0x245   :  { %770 = vmatmul.mubr.f32.vlgmr.msra.gmra.mrb[2].mxu0 %v346_v36 }
 0x246   :  { %839 = vmatprep.mubr.msk.f32.mxu0 %vm1168_vm0, %v1166_v0  ;;  %956 = vmatpush3.bf16.msra.mxu0 %v955_v44  ;;  %v541_v0 = vld [vmem:[#allocation11 + $0x30] sm:$0xff] }
 0x247   :  { %957 = vmatprep.subr.bf16.mxu0 %v1167_v38  ;;  %v964_v51 = vpack.c.bf16 %v542_v50, %v541_v0 }
 0x24a   :  { %959 = vmatpush3.bf16.msra.mxu0 %v958_v46 }
 0x24b   :  { %960 = vmatprep.subr.bf16.mxu0 %v1167_v38 }
 0x24e   :  { %962 = vmatpush3.bf16.msra.mxu0 %v961_v49 }
 0x24f   :  { %963 = vmatprep.subr.bf16.mxu0 %v1167_v38 }
 0x252   :  { %965 = vmatpush3.bf16.msra.mxu0 %v964_v51 }
 0x253   :  { %966 = vmatprep.subr.bf16.mxu0 %v1167_v38 }
 0x256   :  { %968 = vmatpush3.bf16.msra.mxu0 %v967_v54 }
 0x257   :  { %969 = vmatprep.subr.bf16.mxu0 %v1167_v38 }
 0x25a   :  { %971 = vmatpush3.bf16.msra.mxu0 %v970_v57 }
 0x25b   :  { %972 = vmatprep.subr.bf16.mxu0 %v1167_v38 }
 0x25e   :  { %974 = vmatpush3.bf16.msra.mxu0 %v973_v60 }
 0x25f   :  { %975 = vmatprep.subr.bf16.mxu0 %v1167_v38 }
 0x262   :  { %977 = vmatpush3.bf16.msra.mxu0 %v976_v5 }
 0x318   :  { %v436_v62 = vpop.f32.mrb[2].mxu0 }
 0x319   :  { %v437_v63 = vadd.f32 %v648_v61, %v436_v62  ;;  %v771_v1 = vpop.f32.mrb[3].mxu0 }
 0x31b   :  { %v440_v2 = vmax.f32 %v437_v63, 0.0 }
 0x31d   :  { %805 = vmatmul.mubr.f32.vlgmr.msra.gmra.mrb[2].mxu1 %v440_v2 }
 0x3f0   :  { %v530_v7 = vpop.f32.mrb[2].mxu1 }
 0x3f1   :  { %v531_v8 = vadd.f32 %v649_v6, %v530_v7  ;;  %v806_v38 = vpop.f32.mrb[3].mxu1 }
 0x3f3   :  { %v534_v9 = vmax.f32 %v531_v8, 0.0 }
 0x3f5   :  { %840 = vmatmul.mubr.f32.vlgmr.msra.gmra.mrb[4].mxu0 %v534_v9 }
 0x4c8   :  { %v624_v11 = vpop.f32.mrb[4].mxu0 }
 0x4c9   :  { %v625_v12 = vadd.f32 %v650_v10, %v624_v11  ;;  %v841_v13 = vpop.f32.mrb[5].mxu0 }
 0x4cb   :  { %628 = vst [vmem:[#allocation13] sm:$0xff] %v625_v12 }
 0x4cc   :  { %1135 = shalt.err (!%p1132_p10)
}
 0x4cd   :  { %s1136_s3 = scalar_lea.hbm %s1383_s11, 128 }
 0x4ce   :  { %p1137_p11 = scmp.ne.s32.totalorder %s1383_s11, %s1136_s3  ;;  %p1140_p12 = scmp.lt.u32.totalorder %s1136_s3, %s1383_s11 }
 0x4d0   :  { %p1142_p13 = pnand %p1140_p12, %p1137_p11 }
 0x4d2   :  { %1145 = shalt.err (!%p1142_p13)
}
 0x4d3   :  { %638 = dma.vmem_to_hbm [thread:$0]  %s636_s13, 128, %s1383_s11, [#allocation4]  }
 0x4d4   :  { %1154 = dma.done.wait [#allocation4], 128  }
 0x4d5   :  { %1155 = vsyncadd [#allocation4], 4294967168 }
 0x4d6   :  { %642 = vsyncpa [#allocation3], 1 }
 0x4d7   :  { %643 = vsyncpa [#allocation6], 1 }
 0x4d8   :  { %644 = vsyncpa [#allocation9], 1 }
 0x4d9   :  { %645 = vsyncpa [#allocation12], 1 }
 0x4da   :  { %646 = vsyncpa [#allocation4], 1 }

</bundles_post_ra>
